<compile_context>
chip_gen: v5e
topology: v5e:2x2
jax: 0.10.0
libtpu: 0.0.40
codegen_flags: <defaults>
</compile_context>

<pallas_src>
import functools

import jax
import jax.numpy as jnp
from jax.experimental import pallas as pl
from jax.experimental.pallas import tpu as pltpu

_EPS = 1e-6  # F.pairwise_distance default eps


def _round_up(x, m):
    return (x + m - 1) // m * m


def _tpu_config():
    """Generation-aware defaults (num_cores, per-tile bytes, vmem limit)."""
    kind = ""
    try:
        kind = jax.devices()[0].device_kind.lower()
    except Exception:
        pass
    if "v7" in kind or "7x" in kind:
        # 2 TensorCores/chip, 64 MiB VMEM per TC.
        return dict(num_cores=2, tile_bytes=6 << 20, vmem_limit=48 << 20)
    if "v4" in kind or "v5p" in kind:
        # Megacore chips, 128 MiB VMEM.
        return dict(num_cores=2, tile_bytes=8 << 20, vmem_limit=64 << 20)
    if "v6" in kind or "v5e" in kind or "lite" in kind:
        # Single TensorCore, 128 MiB VMEM.
        return dict(num_cores=1, tile_bytes=8 << 20, vmem_limit=64 << 20)
    # Unknown generation: conservative, safe anywhere.
    return dict(num_cores=1, tile_bytes=2 << 20, vmem_limit=None)


def _triplet_softmax_kernel(dista_ref, distb_ref, out_ref, *,
                            margin, block_n, steps, n_total, mask_needed):
    c = pl.program_id(0)           # core (parallel) axis
    i = pl.program_id(1)           # reduction (arbitrary) axis

    # Output slab stays resident across the reduction axis -> it IS the
    # accumulator.  Zero it on the first step of each core's sweep.
    @pl.when(i == 0)
    def _init():
        out_ref[...] = jnp.zeros_like(out_ref)

    a = dista_ref[...].astype(jnp.float32)        # (block_n, D)
    b = distb_ref[...].astype(jnp.float32)        # (block_n, D)

    # exp(b)/(exp(a)+exp(b)) - (exp(a)/(exp(a)+exp(b)) - margin) + eps
    #   == tanh((b - a)/2) + margin + eps          (single EUP op per element)
    diff = jnp.tanh((b - a) * jnp.float32(0.5)) + jnp.float32(margin + _EPS)

    # p=2 pairwise distance along the feature dim -> one loss per row.
    losses = jnp.sqrt(jnp.sum(diff * diff, axis=-1, keepdims=True))  # (block_n, 1)

    if mask_needed:
        row0 = (c * steps + i) * block_n
        crosses = row0 + block_n > n_total

        @pl.when(jnp.logical_not(crosses))
        def _fast():
            out_ref[...] += jnp.sum(losses)

        @pl.when(crosses)
        def _masked():
            row_ids = row0 + jax.lax.broadcasted_iota(jnp.int32, (block_n, 1), 0)
            masked = jnp.where(row_ids < n_total, losses, jnp.float32(0.0))
            out_ref[...] += jnp.sum(masked)
    else:
        out_ref[...] += jnp.sum(losses)


def triplet_loss_softmax(dista, distb, *, margin, size_average=True,
                         block_n=None, num_cores=None,
                         tile_bytes=None, vmem_limit_bytes=None):
    """Pallas implementation of TripletLossSoftmax.forward.

    dista, distb: (N, D) arrays.  Returns a () float32 scalar.
    """
    assert dista.shape == distb.shape and dista.ndim == 2
    n, d = dista.shape

    cfg = _tpu_config()
    if num_cores is None:
        num_cores = cfg["num_cores"]
    if tile_bytes is None:
        tile_bytes = cfg["tile_bytes"]
    if vmem_limit_bytes is None:
        vmem_limit_bytes = cfg["vmem_limit"]

    itemsize = jnp.dtype(dista.dtype).itemsize
    if block_n is None:
        # Per-input-tile VMEM budget, sized from the actual input dtype so
        # narrow dtypes get proportionally more rows per step.
        by_vmem = max(8, (tile_bytes // (d * itemsize)) // 8 * 8)
        per_core = _round_up(pl.cdiv(n, num_cores), 8)
        block_n = min(by_vmem, per_core)
    block_n = max(8, _round_up(block_n, 8))

    total_blocks = pl.cdiv(n, block_n)            # real blocks covering N rows
    steps = pl.cdiv(total_blocks, num_cores)      # reduction steps per core
    # Mask only needed if the (num_cores * steps * block_n) coverage exceeds N.
    mask_needed = (num_cores * steps * block_n) != n

    kernel = functools.partial(
        _triplet_softmax_kernel,
        margin=float(margin), block_n=block_n, steps=steps,
        n_total=n, mask_needed=mask_needed)

    def in_index(c, i):
        # Clamp so grid points beyond the real block count re-read the last
        # valid block (kept in-bounds; their rows are masked to zero).
        return (jnp.minimum(c * steps + i, total_blocks - 1), 0)

    in_spec = pl.BlockSpec((block_n, d), in_index)

    out = pl.pallas_call(
        kernel,
        # One (8, 128)-aligned slab per core; every element of slab c holds
        # that core's partial sum.
        out_shape=jax.ShapeDtypeStruct((num_cores, 8, 128), jnp.float32),
        grid_spec=pltpu.PrefetchScalarGridSpec(
            num_scalar_prefetch=0,
            grid=(num_cores, steps),
            in_specs=[in_spec, in_spec],
            out_specs=pl.BlockSpec((1, 8, 128), lambda c, i: (c, 0, 0)),
        ),
        compiler_params=pltpu.CompilerParams(
            dimension_semantics=("parallel", "arbitrary"),
            vmem_limit_bytes=vmem_limit_bytes,
        ),
        cost_estimate=pl.CostEstimate(
            flops=4 * n * d,
            transcendentals=n * d + n,
            bytes_accessed=2 * n * d * itemsize + num_cores * 8 * 128 * 4,
        ),
    )(dista, distb)

    total = jnp.sum(out[:, 0, 0])
    if size_average:
        return total / jnp.float32(n)
    return total


def _reference(dista, distb, margin, size_average=True):
    ea = jnp.exp(dista.astype(jnp.float32))
    eb = jnp.exp(distb.astype(jnp.float32))
    s = ea + eb
    pos = eb / s
    neg = ea / s - margin
    diff = pos - neg + _EPS
    losses = jnp.sqrt(jnp.sum(diff * diff, axis=-1))
    return jnp.mean(losses) if size_average else jnp.sum(losses)


if __name__ == "__main__":
    key = jax.random.PRNGKey(0)
    k1, k2 = jax.random.split(key)

    N, D = 8, 128            # small batch of distance vectors
    margin = 0.2

    dista = jax.random.normal(k1, (N, D), dtype=jnp.float32)
    distb = jax.random.normal(k2, (N, D), dtype=jnp.float32)

    loss = jax.block_until_ready(
        triplet_loss_softmax(dista, distb, margin=margin, size_average=True))
    ref = _reference(dista, distb, margin, size_average=True)
    assert jnp.allclose(loss, ref, rtol=1e-5, atol=1e-5), (loss, ref)

    # size_average=False path.
    loss_sum = jax.block_until_ready(
        triplet_loss_softmax(dista, distb, margin=margin, size_average=False))
    ref_sum = _reference(dista, distb, margin, size_average=False)
    assert jnp.allclose(loss_sum, ref_sum, rtol=1e-5, atol=1e-5), (loss_sum, ref_sum)

    # Ragged N: no wrapper padding -> exercises boundary-block row masking.
    k3, k4 = jax.random.split(k2)
    da2 = jax.random.normal(k3, (10, 256), dtype=jnp.float32)
    db2 = jax.random.normal(k4, (10, 256), dtype=jnp.float32)
    loss2 = jax.block_until_ready(
        triplet_loss_softmax(da2, db2, margin=margin, size_average=True))
    ref2 = _reference(da2, db2, margin, size_average=True)
    assert jnp.allclose(loss2, ref2, rtol=1e-5, atol=1e-5), (loss2, ref2)

    # Multi-step reduction + clamped fully-out-of-range block (forced 2-core
    # split; correct on single-TC chips, just serial).
    k5, k6 = jax.random.split(k4)
    da3 = jax.random.normal(k5, (50, 128), dtype=jnp.float32)
    db3 = jax.random.normal(k6, (50, 128), dtype=jnp.float32)
    loss3 = jax.block_until_ready(
        triplet_loss_softmax(da3, db3, margin=margin, block_n=8, num_cores=2))
    ref3 = _reference(da3, db3, margin, size_average=True)
    assert jnp.allclose(loss3, ref3, rtol=1e-5, atol=1e-5), (loss3, ref3)

    print("KERNEL_OK")
</pallas_src>

<mosaic_0001>
module attributes {stable_mosaic.version = 11 : i64} {
  func.func @_triplet_softmax_kernel(%arg0: i32, %arg1: i32, %arg2: memref<8x128xf32, #tpu.memory_space<vmem>>, %arg3: memref<8x128xf32, #tpu.memory_space<vmem>>, %arg4: memref<1x8x128xf32, #tpu.memory_space<vmem>>) attributes {dimension_semantics = [#tpu.dimension_semantics<parallel>, #tpu.dimension_semantics<arbitrary>], iteration_bounds = array<i64: 1, 1>, scalar_prefetch = 0 : i64, scratch_operands = 0 : i64, tpu.core_type = #tpu.core_type<tc>, window_params = [{transform_indices = @transform_0, window_bounds = array<i64: 8, 128>}, {transform_indices = @transform_1, window_bounds = array<i64: 8, 128>}, {transform_indices = @transform_2, window_bounds = array<i64: 1, 8, 128>}]} {
    %c0_i32 = arith.constant 0 : i32
    %0 = arith.cmpi eq, %arg1, %c0_i32 : i32
    %1 = arith.extui %0 : i1 to i32
    %c0_i32_0 = arith.constant 0 : i32
    %2 = arith.cmpi ne, %1, %c0_i32_0 : i32
    scf.if %2 {
      %cst_13 = arith.constant 0.000000e+00 : f32
      %23 = vector.broadcast %cst_13 : f32 to vector<1x8x128xf32>
      %c0_14 = arith.constant 0 : index
      %c0_15 = arith.constant 0 : index
      %c0_16 = arith.constant 0 : index
      %24 = vector.load %arg4[%c0_14, %c0_15, %c0_16] : memref<1x8x128xf32, #tpu.memory_space<vmem>>, vector<1x8x128xf32>
      tpu.vector_store %arg4[%c0_14, %c0_15, %c0_16], %23 {strides = array<i32>} : memref<1x8x128xf32, #tpu.memory_space<vmem>>, vector<1x8x128xf32>,
    } else {
    }
    %c0 = arith.constant 0 : index
    %c0_1 = arith.constant 0 : index
    %3 = vector.load %arg2[%c0, %c0_1] : memref<8x128xf32, #tpu.memory_space<vmem>>, vector<8x128xf32>
    %c0_2 = arith.constant 0 : index
    %c0_3 = arith.constant 0 : index
    %4 = vector.load %arg3[%c0_2, %c0_3] : memref<8x128xf32, #tpu.memory_space<vmem>>, vector<8x128xf32>
    %5 = arith.subf %4, %3 : vector<8x128xf32>
    %cst = arith.constant 5.000000e-01 : f32
    %6 = vector.broadcast %cst : f32 to vector<8x128xf32>
    %7 = arith.mulf %5, %6 : vector<8x128xf32>
    %8 = math.tanh %7 : vector<8x128xf32>
    %cst_4 = arith.constant 2.000010e-01 : f32
    %9 = vector.broadcast %cst_4 : f32 to vector<8x128xf32>
    %10 = arith.addf %8, %9 : vector<8x128xf32>
    %11 = arith.mulf %10, %10 : vector<8x128xf32>
    %cst_5 = arith.constant dense<0.000000e+00> : vector<8xf32>
    %12 = vector.multi_reduction <add>, %11, %cst_5 [1] : vector<8x128xf32> to vector<8xf32>
    %13 = vector.shape_cast %12 : vector<8xf32> to vector<8x1xf32>
    %14 = math.sqrt %13 : vector<8x1xf32>
    %c0_6 = arith.constant 0 : index
    %c0_7 = arith.constant 0 : index
    %c0_8 = arith.constant 0 : index
    %15 = vector.load %arg4[%c0_6, %c0_7, %c0_8] : memref<1x8x128xf32, #tpu.memory_space<vmem>>, vector<1x8x128xf32>
    %16 = vector.shape_cast %14 : vector<8x1xf32> to vector<1x8x1xf32>
    %cst_9 = arith.constant dense<0.000000e+00> : vector<1xf32>
    %17 = vector.multi_reduction <add>, %16, %cst_9 [1, 2] : vector<1x8x1xf32> to vector<1xf32>
    %18 = vector.shape_cast %17 : vector<1xf32> to vector<1x1x1xf32>
    %19 = vector.extract %18[0, 0, 0] : f32 from vector<1x1x1xf32>
    %20 = vector.broadcast %19 : f32 to vector<1x8x128xf32>
    %21 = arith.addf %15, %20 : vector<1x8x128xf32>
    %c0_10 = arith.constant 0 : index
    %c0_11 = arith.constant 0 : index
    %c0_12 = arith.constant 0 : index
    %22 = vector.load %arg4[%c0_10, %c0_11, %c0_12] : memref<1x8x128xf32, #tpu.memory_space<vmem>>, vector<1x8x128xf32>
    tpu.vector_store %arg4[%c0_10, %c0_11, %c0_12], %21 {strides = array<i32>} : memref<1x8x128xf32, #tpu.memory_space<vmem>>, vector<1x8x128xf32>,
    return
  }
  func.func @transform_0(%arg0: i32, %arg1: i32) -> (i32, i32) {
    %c1_i32 = arith.constant 1 : i32
    %0 = arith.muli %arg0, %c1_i32 : i32
    %1 = arith.addi %0, %arg1 : i32
    %c0_i32 = arith.constant 0 : i32
    %2 = arith.minsi %1, %c0_i32 : i32
    %c0_i32_0 = arith.constant 0 : i32
    %c0_i32_1 = arith.constant 0 : i32
    return %2, %c0_i32_0 : i32, i32
  }
  func.func @transform_1(%arg0: i32, %arg1: i32) -> (i32, i32) {
    %c1_i32 = arith.constant 1 : i32
    %0 = arith.muli %arg0, %c1_i32 : i32
    %1 = arith.addi %0, %arg1 : i32
    %c0_i32 = arith.constant 0 : i32
    %2 = arith.minsi %1, %c0_i32 : i32
    %c0_i32_0 = arith.constant 0 : i32
    %c0_i32_1 = arith.constant 0 : i32
    return %2, %c0_i32_0 : i32, i32
  }
  func.func @transform_2(%arg0: i32, %arg1: i32) -> (i32, i32, i32) {
    %c0_i32 = arith.constant 0 : i32
    %c0_i32_0 = arith.constant 0 : i32
    %c0_i32_1 = arith.constant 0 : i32
    return %arg0, %c0_i32, %c0_i32_0 : i32, i32, i32
  }
}

</mosaic_0001>

<bundles_post_ra>
// kernel: tpu_custom_call.1
= control target key start
LH: loop header
LB: loop body
LE: loop exit
PB: predicated region body
PF: predicated region fallthrough
CT: control target
= control target key end

     0   :  { %7 = vsyncpa [#allocation3], 0  ;;  %s234_s0 = inlined_call_operand.hbm [shape: f32[8,128], index: 0, kind: input, shape index: {}]   ;;  %s235_s1 = inlined_call_operand.hbm [shape: f32[8,128], index: 1, kind: input, shape index: {}]   ;;  %s236_s2 = inlined_call_operand.hbm [shape: f32[1,8,128], index: 2, kind: output, shape index: {}]  }
   0x1   :  { %8 = vsyncpa [#allocation6], 0 }
   0x2   :  { %9 = vsyncpa [#allocation4], 0  ;;  %s20_s11 = sshll.u32 %s234_s0, 4  ;;  %s207_s12 = smov [#allocation2]   ;;  %s21_s11 = int_to_ptr.hbm [resolvable:$true] %s20_s11 }
   0x3   :  { %s22_s13 = sshll.u32 %s207_s12, 4  ;;  %s36_s16 = sshll.u32 %s235_s1, 4  ;;  %s23_s13 = int_to_ptr.vmem [resolvable:$true] %s22_s13  ;;  %s37_s16 = int_to_ptr.hbm [resolvable:$true] %s36_s16 }
   0x4   :  { %25 = dma.hbm_to_vmem [thread:$0]  %s21_s11, 128, %s23_s13, [#allocation3]  }
   0x5   :  { %s208_s17 = smov [#allocation5]  }
   0x6   :  { %s38_s18 = sshll.u32 %s208_s17, 4  ;;  %s39_s18 = int_to_ptr.vmem [resolvable:$true] %s38_s18 }
   0x7   :  { %41 = dma.hbm_to_vmem [thread:$0]  %s37_s16, 128, %s39_s18, [#allocation6]  }
   0x8   :  { %201 = dma.done.wait [#allocation3], 128  }
   0x9   :  { %202 = vsyncadd [#allocation3], 4294967168 }
   0xa   :  { %203 = dma.done.wait [#allocation6], 128  }
   0xb   :  { %204 = vsyncadd [#allocation6], 4294967168  ;;  %v61_v0 = vld [vmem:[#allocation2] sm:$0xff]  ;;  %v62_v1 = vld [vmem:[#allocation5] sm:$0xff]  ;;  %vm83_vm1 = vcmask 7168   ;;  %s209_s0 = smov [#allocation7]  }
   0xc   :  { %v63_v2 = vsub.f32 %v62_v1, %v61_v0  ;;  %s102_s1 = sshll.u32 %s209_s0, 4  ;;  %s104_s21 = sshll.u32 %s236_s2, 4  ;;  %s103_s1 = int_to_ptr.vmem [resolvable:$true] %s102_s1  ;;  %s105_s21 = int_to_ptr.hbm [resolvable:$true] %s104_s21 }
   0xe   :  { %v64_v3 = vmul.f32 0.5, %v63_v2 }
  0x10   :  { %125 = vtanh.f32 %v64_v3 }
  0x16   :  { %v126_v4 = vpop.eup %125 }
  0x17   :  { %v66_v5 = vadd.f32 0.200001, %v126_v4 }
  0x19   :  { %v67_v6 = vmul.f32 %v66_v5, %v66_v5 }
  0x1b   :  { %68 = vadd.xlane.f32.xlu0 %v67_v6 }
  0x8e   :  { %v69_v7 = vpop.xlane.xlu0 %68 }
  0x8f   :  { %127 = vrsqrt.f32 %v69_v7  ;;  %vm77_vm0 = vcmp.eq.f32.partialorder %v69_v7, inf  ;;  %v80_v15 = vand.u32 2147483648, %v69_v7  ;;  %vm79_vm2 = vcmp.eq.f32.partialorder %v69_v7, 0.0 }
  0x95   :  { %v128_v8 = vpop.eup %127 }
  0x96   :  { %v71_v9 = vmul.f32 %v128_v8, %v69_v7 }
  0x98   :  { %v72_v10 = vmul.f32 %v128_v8, %v71_v9 }
  0x9a   :  { %v73_v11 = vmul.f32 0.5, %v72_v10 }
  0x9c   :  { %v74_v12 = vsub.f32 1.5, %v73_v11 }
  0x9e   :  { %v75_v13 = vmul.f32 %v128_v8, %v74_v12 }
  0xa0   :  { %v76_v14 = vmul.f32 %v75_v13, %v69_v7 }
  0xa2   :  { %v78_v16 = vsel %vm77_vm0, %v69_v7, %v76_v14 }
  0xa3   :  { %v81_v17 = vsel %vm79_vm2, %v80_v15, %v78_v16 }
  0xa4   :  { %v84_v18 = vsel %vm83_vm1, %v81_v17, 0.0 }
  0xa5   :  { %85 = vadd.xlane.f32.xlu0 %v84_v18 }
 0x118   :  { %v86_v19 = vpop.xlane.xlu0 %85 }
 0x119   :  { %v87_v20 = vrot.slane %v86_v19, 4 }
 0x11b   :  { %v88_v21 = vadd.f32 %v87_v20, %v86_v19 }
 0x11d   :  { %v89_v22 = vrot.slane %v88_v21, 2 }
 0x11f   :  { %v90_v23 = vadd.f32 %v89_v22, %v88_v21 }
 0x121   :  { %v91_v24 = vrot.slane %v90_v23, 1 }
 0x123   :  { %v92_v25 = vadd.f32 %v91_v24, %v90_v23 }
 0x125   :  { %119 = vpush %v92_v25 }
 0x156   :  { %s120_s22 = spop %119 }
 0x157   :  { %v94_v26 = vstv %s120_s22 }
 0x158   :  { %96 = vst [vmem:[#allocation7] sm:$0xff] %v94_v26 }
 0x159   :  { %107 = dma.vmem_to_hbm [thread:$0]  %s103_s1, 128, %s105_s21, [#allocation4]  }
 0x15a   :  { %205 = dma.done.wait [#allocation4], 128  }
 0x15b   :  { %206 = vsyncadd [#allocation4], 4294967168 }
 0x15c   :  { %112 = vsyncpa [#allocation3], 1 }
 0x15d   :  { %113 = vsyncpa [#allocation6], 1 }
 0x15e   :  { %114 = vsyncpa [#allocation4], 1 }

</bundles_post_ra>
